<compile_context>
chip_gen: v7x
topology: tpu7x:2x2x1
jax: 0.10.0
libtpu: 0.0.40
codegen_flags: <defaults>
</compile_context>

<pallas_src>
import functools
import math

import jax
import jax.numpy as jnp
from jax import lax
from jax.experimental import pallas as pl
from jax.experimental.pallas import tpu as pltpu

_LANES = 128               # lane width (fast vreg axis)
_SUBLANES = 8              # f32 sublane granularity
_DEFAULT_BLOCK_ROWS = 128  # lookups gathered / stored per grid step


def _round_up(x: int, m: int) -> int:
    return ((x + m - 1) // m) * m


def _cdiv(a: int, b: int) -> int:
    return -(-a // b)


def _fused_gather_kernel(
    # blocked index columns, (block_rows, 1) int32 (VMEM)
    uid_ref, iid_ref, aid_ref,
    # VMEM-resident, lane-padded embedding tables (single-buffered)
    utbl_ref, itbl_ref, atbl_ref,
    # dense (block_rows, d_pad) output blocks
    uout_ref, iout_ref, aout_ref,
    *, nblks,
):
    i = pl.program_id(0)
    grid_len = max(nblks)

    def gather(ids_ref, tbl_ref, out_ref, nblk_k):
        def body():
            n_rows = tbl_ref.shape[0]
            block_rows = out_ref.shape[0]
            tbl = tbl_ref[...]
            # Vectorized clamp of the whole index block. (torch.nn.Embedding
            # raises on out-of-range ids; here they are clamped into range.)
            ids = jnp.clip(ids_ref[...], 0, n_rows - 1)            # (block_rows, 1)
            # Vectorized gather as a one-hot matmul on the otherwise-idle MXU:
            # a single dense (block_rows, d) result per table per step -- no
            # per-row slices, no concatenate / sublane relayout, scales to
            # large block_rows.
            # TODO(synk): where the Mosaic build supports embedding-style
            # jnp.take(tbl, ids, axis=0) lowering, it is a drop-in swap that
            # avoids the O(block_rows * n_rows) one-hot for very large tables.
            cols = lax.broadcasted_iota(jnp.int32, (block_rows, n_rows), 1)
            onehot = (ids == cols).astype(tbl.dtype)               # (block_rows, n_rows)
            out_ref[...] = jnp.dot(
                onehot, tbl,
                precision=lax.Precision.HIGHEST,
                preferred_element_type=jnp.float32,
            ).astype(out_ref.dtype)

        if nblk_k == grid_len:
            body()  # table is live on every grid step: no predicate needed
        else:
            # Smaller tables stop gathering/storing once their rows are done;
            # their (index-map-clamped) last output block stays VMEM-resident
            # and is written back exactly once, so no wasted HBM write-back.
            pl.when(i < nblk_k)(body)

    gather(uid_ref, utbl_ref, uout_ref, nblks[0])
    gather(iid_ref, itbl_ref, iout_ref, nblks[1])
    gather(aid_ref, atbl_ref, aout_ref, nblks[2])


def fused_embedding_lookup(user_tbl, item_tbl, attr_tbl,
                           user_ids, item_ids, attr_ids,
                           *, block_rows=_DEFAULT_BLOCK_ROWS):
    """out_k[i, :] = table_k[ids_k[i], :] for the three tables, one pallas_call."""
    tables = [user_tbl, item_tbl, attr_tbl]
    ids_list = [user_ids, item_ids, attr_ids]
    counts = [int(x.shape[0]) for x in ids_list]
    feat_dims = [int(t.shape[1]) for t in tables]

    # ---- block size --------------------------------------------------------
    # Large blocks amortize the ~0.35us per-grid-step overhead; cap at ~half
    # the largest batch (sublane-rounded) so the grid keeps >= 2 steps when
    # there is enough work (v7x megacore) and tiny batches aren't padded to 128.
    max_count = max(counts)
    block_rows = min(block_rows,
                     max(_SUBLANES, _round_up(_cdiv(max_count, 2), _SUBLANES)))

    nblks = tuple(max(1, _cdiv(c, block_rows)) for c in counts)
    grid_len = max(nblks)

    # ---- lane-pad feature dims so every store is an unmasked, lane-dense vst.
    padded_tables, d_pads = [], []
    for t in tables:
        d = t.shape[1]
        d_pad = _round_up(d, _LANES)
        if d_pad != d:
            t = jnp.pad(t, ((0, 0), (0, d_pad - d)))
        padded_tables.append(t)
        d_pads.append(d_pad)

    # ---- per-table block-rounded index columns (blocked VMEM input).
    padded_ids = []
    for ids, nblk in zip(ids_list, nblks):
        ids = ids.astype(jnp.int32)
        pad = nblk * block_rows - ids.shape[0]
        if pad:
            ids = jnp.pad(ids, (0, pad))
        padded_ids.append(ids.reshape(nblk * block_rows, 1))

    def clamped_map(nblk):
        if nblk == grid_len:
            return lambda i: (i, 0)
        return lambda i: (jnp.minimum(i, nblk - 1), 0)

    def ids_spec(nblk):
        return pl.BlockSpec((block_rows, 1), clamped_map(nblk))

    def tbl_spec(tbl):
        # Full-table block, constant index_map -> VMEM-resident; single buffer
        # so the resident copy does not cost 2x its size in VMEM.
        return pl.BlockSpec(tbl.shape, lambda i: (0, 0),
                            pipeline_mode=pl.Buffered(1))

    def out_spec(nblk, d_pad):
        return pl.BlockSpec((block_rows, d_pad), clamped_map(nblk))

    grid_spec = pltpu.PrefetchScalarGridSpec(
        num_scalar_prefetch=0,
        grid=(grid_len,),
        in_specs=[ids_spec(nblks[0]), ids_spec(nblks[1]), ids_spec(nblks[2]),
                  tbl_spec(padded_tables[0]), tbl_spec(padded_tables[1]),
                  tbl_spec(padded_tables[2])],
        out_specs=[out_spec(nblks[0], d_pads[0]),
                   out_spec(nblks[1], d_pads[1]),
                   out_spec(nblks[2], d_pads[2])],
    )

    out_shapes = tuple(
        jax.ShapeDtypeStruct((nblk * block_rows, d_pad), t.dtype)
        for nblk, d_pad, t in zip(nblks, d_pads, padded_tables))

    # Predicated stores + clamped output index_maps rely on sequential grid
    # execution; only shard across TensorCores when all trip counts match.
    if all(n == grid_len for n in nblks):
        dim_sem = ("parallel",)
    else:
        dim_sem = ("arbitrary",)

    # VMEM budget: resident tables (x1, single-buffered) + double-buffered
    # output / index blocks + headroom.  Sized explicitly so v5e's 16 MiB
    # default scoped limit is never the binding constraint.
    tbl_bytes = sum(int(t.size) * t.dtype.itemsize for t in padded_tables)
    out_bytes = sum(2 * block_rows * d_pad * 4 for d_pad in d_pads)
    ids_bytes = 3 * 2 * block_rows * _LANES * 4   # (block_rows,1) i32, lane-padded
    vmem_limit = int(min(112 * 2**20,
                         max(tbl_bytes + out_bytes + ids_bytes + (2 << 20),
                             16 * 2**20)))

    outs = pl.pallas_call(
        functools.partial(_fused_gather_kernel, nblks=nblks),
        out_shape=out_shapes,
        grid_spec=grid_spec,
        compiler_params=pltpu.CompilerParams(
            dimension_semantics=dim_sem,
            vmem_limit_bytes=vmem_limit,
        ),
    )(*padded_ids, *padded_tables)

    # Trim block-rounding rows / lane padding (no-op when already exact).
    result = []
    for o, count, d in zip(outs, counts, feat_dims):
        if o.shape[0] != count or o.shape[1] != d:
            o = o[:count, :d]
        result.append(o)
    return tuple(result)


def xavier_normal(key, shape):
    # torch.nn.init.xavier_normal_ on an Embedding weight (n, d):
    #   fan_in = d, fan_out = n, std = sqrt(2 / (fan_in + fan_out))
    fan_out, fan_in = shape
    std = math.sqrt(2.0 / (fan_in + fan_out))
    return std * jax.random.normal(key, shape, dtype=jnp.float32)


class MyEmbeddingLayerPallas:
    def __init__(self, n_users, n_items, n_attributes, ncaps, hidden_size, key):
        ku, ki, ka = jax.random.split(key, 3)
        self.user_emb_matrix = xavier_normal(ku, (n_users, ncaps * hidden_size))
        self.item_emb_matrix = xavier_normal(ki, (n_items, ncaps * hidden_size))
        self.attribute_emb_matrix = xavier_normal(ka, (n_attributes, hidden_size))

    def __call__(self, user_nodes, item_nodes, attribute_nodes):
        return fused_embedding_lookup(
            self.user_emb_matrix,
            self.item_emb_matrix,
            self.attribute_emb_matrix,
            user_nodes,
            item_nodes,
            attribute_nodes,
        )


if __name__ == "__main__":
    # Small, deterministic configuration; unbalanced lookup counts exercise
    # the per-table trip counts + predication path.
    n_users, n_items, n_attributes = 32, 48, 24
    ncaps, hidden_size = 4, 32          # ncaps*hidden = 128 (lane-dense)
    n_user_lookup, n_item_lookup, n_attr_lookup = 8, 12, 6

    key = jax.random.PRNGKey(0)
    k_params, k_u, k_i, k_a = jax.random.split(key, 4)

    layer = MyEmbeddingLayerPallas(
        n_users, n_items, n_attributes, ncaps, hidden_size, k_params
    )

    user_nodes = jax.random.randint(k_u, (n_user_lookup,), 0, n_users, dtype=jnp.int32)
    item_nodes = jax.random.randint(k_i, (n_item_lookup,), 0, n_items, dtype=jnp.int32)
    attribute_nodes = jax.random.randint(
        k_a, (n_attr_lookup,), 0, n_attributes, dtype=jnp.int32
    )

    user_emb, item_emb, attribute_emb = layer(user_nodes, item_nodes, attribute_nodes)
    jax.block_until_ready((user_emb, item_emb, attribute_emb))

    # Correctness check against plain-JAX reference gathers.
    ref_u = layer.user_emb_matrix[user_nodes]
    ref_i = layer.item_emb_matrix[item_nodes]
    ref_a = layer.attribute_emb_matrix[attribute_nodes]
    assert user_emb.shape == (n_user_lookup, ncaps * hidden_size)
    assert item_emb.shape == (n_item_lookup, ncaps * hidden_size)
    assert attribute_emb.shape == (n_attr_lookup, hidden_size)
    assert jnp.allclose(user_emb, ref_u, rtol=1e-3, atol=1e-3)
    assert jnp.allclose(item_emb, ref_i, rtol=1e-3, atol=1e-3)
    assert jnp.allclose(attribute_emb, ref_a, rtol=1e-3, atol=1e-3)

    print("KERNEL_OK")
</pallas_src>

<mosaic_0001>
module attributes {stable_mosaic.version = 11 : i64} {
  func.func @_fused_gather_kernel(%arg0: i32, %arg1: memref<8x1xi32, #tpu.memory_space<vmem>>, %arg2: memref<8x1xi32, #tpu.memory_space<vmem>>, %arg3: memref<8x1xi32, #tpu.memory_space<vmem>>, %arg4: memref<32x128xf32, #tpu.memory_space<vmem>>, %arg5: memref<48x128xf32, #tpu.memory_space<vmem>>, %arg6: memref<24x128xf32, #tpu.memory_space<vmem>>, %arg7: memref<8x128xf32, #tpu.memory_space<vmem>>, %arg8: memref<8x128xf32, #tpu.memory_space<vmem>>, %arg9: memref<8x128xf32, #tpu.memory_space<vmem>>) attributes {dimension_semantics = [#tpu.dimension_semantics<arbitrary>], iteration_bounds = array<i64: 2>, scalar_prefetch = 0 : i64, scratch_operands = 0 : i64, tpu.core_type = #tpu.core_type<tc>, window_params = [{transform_indices = @transform_0, window_bounds = array<i64: 8, 1>}, {transform_indices = @transform_1, window_bounds = array<i64: 8, 1>}, {transform_indices = @transform_2, window_bounds = array<i64: 8, 1>}, {pipeline_mode = #tpu.pipeline_mode<synchronous>, transform_indices = @transform_3, window_bounds = array<i64: 32, 128>}, {pipeline_mode = #tpu.pipeline_mode<synchronous>, transform_indices = @transform_4, window_bounds = array<i64: 48, 128>}, {pipeline_mode = #tpu.pipeline_mode<synchronous>, transform_indices = @transform_5, window_bounds = array<i64: 24, 128>}, {transform_indices = @transform_6, window_bounds = array<i64: 8, 128>}, {transform_indices = @transform_7, window_bounds = array<i64: 8, 128>}, {transform_indices = @transform_8, window_bounds = array<i64: 8, 128>}]} {
    %c1_i32 = arith.constant 1 : i32
    %0 = arith.cmpi slt, %arg0, %c1_i32 : i32
    %1 = arith.extui %0 : i1 to i32
    %c0_i32 = arith.constant 0 : i32
    %2 = arith.cmpi ne, %1, %c0_i32 : i32
    scf.if %2 {
      %c0_8 = arith.constant 0 : index
      %c0_9 = arith.constant 0 : index
      %19 = vector.load %arg4[%c0_8, %c0_9] : memref<32x128xf32, #tpu.memory_space<vmem>>, vector<32x128xf32>
      %c0_10 = arith.constant 0 : index
      %c0_11 = arith.constant 0 : index
      %20 = vector.load %arg1[%c0_10, %c0_11] : memref<8x1xi32, #tpu.memory_space<vmem>>, vector<8x1xi32>
      %c0_i32_12 = arith.constant 0 : i32
      %c31_i32 = arith.constant 31 : i32
      %21 = vector.broadcast %c0_i32_12 : i32 to vector<8x1xi32>
      %22 = arith.maxsi %21, %20 : vector<8x1xi32>
      %23 = vector.broadcast %c31_i32 : i32 to vector<8x1xi32>
      %24 = arith.minsi %23, %22 : vector<8x1xi32>
      %25 = tpu.iota {dimensions = array<i32: 1>} : vector<8x32xi32>
      %26 = vector.broadcast %24 : vector<8x1xi32> to vector<8x32xi32>
      %27 = arith.cmpi eq, %26, %25 : vector<8x32xi32>
      %28 = arith.extui %27 : vector<8x32xi1> to vector<8x32xi32>
      %29 = arith.sitofp %28 : vector<8x32xi32> to vector<8x32xf32>
      %cst_13 = arith.constant dense<0.000000e+00> : vector<8x128xf32>
      %30 = tpu.matmul %29, %19, %cst_13 {dimension_numbers = #tpu.dot_dimension_numbers<[1], [0], [0], [1], [0, 0, 1, 1], [], []>, precision = #tpu.contract_precision<fp32>} : vector<8x32xf32>, vector<32x128xf32>, vector<8x128xf32> -> vector<8x128xf32>
      %c0_14 = arith.constant 0 : index
      %c0_15 = arith.constant 0 : index
      %31 = vector.load %arg7[%c0_14, %c0_15] : memref<8x128xf32, #tpu.memory_space<vmem>>, vector<8x128xf32>
      tpu.vector_store %arg7[%c0_14, %c0_15], %30 {strides = array<i32>} : memref<8x128xf32, #tpu.memory_space<vmem>>, vector<8x128xf32>,
    } else {
    }
    %c0 = arith.constant 0 : index
    %c0_0 = arith.constant 0 : index
    %3 = vector.load %arg5[%c0, %c0_0] : memref<48x128xf32, #tpu.memory_space<vmem>>, vector<48x128xf32>
    %c0_1 = arith.constant 0 : index
    %c0_2 = arith.constant 0 : index
    %4 = vector.load %arg2[%c0_1, %c0_2] : memref<8x1xi32, #tpu.memory_space<vmem>>, vector<8x1xi32>
    %c0_i32_3 = arith.constant 0 : i32
    %c47_i32 = arith.constant 47 : i32
    %5 = vector.broadcast %c0_i32_3 : i32 to vector<8x1xi32>
    %6 = arith.maxsi %5, %4 : vector<8x1xi32>
    %7 = vector.broadcast %c47_i32 : i32 to vector<8x1xi32>
    %8 = arith.minsi %7, %6 : vector<8x1xi32>
    %9 = tpu.iota {dimensions = array<i32: 1>} : vector<8x48xi32>
    %10 = vector.broadcast %8 : vector<8x1xi32> to vector<8x48xi32>
    %11 = arith.cmpi eq, %10, %9 : vector<8x48xi32>
    %12 = arith.extui %11 : vector<8x48xi1> to vector<8x48xi32>
    %13 = arith.sitofp %12 : vector<8x48xi32> to vector<8x48xf32>
    %cst = arith.constant dense<0.000000e+00> : vector<8x128xf32>
    %14 = tpu.matmul %13, %3, %cst {dimension_numbers = #tpu.dot_dimension_numbers<[1], [0], [0], [1], [0, 0, 1, 1], [], []>, precision = #tpu.contract_precision<fp32>} : vector<8x48xf32>, vector<48x128xf32>, vector<8x128xf32> -> vector<8x128xf32>
    %c0_4 = arith.constant 0 : index
    %c0_5 = arith.constant 0 : index
    %15 = vector.load %arg8[%c0_4, %c0_5] : memref<8x128xf32, #tpu.memory_space<vmem>>, vector<8x128xf32>
    tpu.vector_store %arg8[%c0_4, %c0_5], %14 {strides = array<i32>} : memref<8x128xf32, #tpu.memory_space<vmem>>, vector<8x128xf32>,
    %c1_i32_6 = arith.constant 1 : i32
    %16 = arith.cmpi slt, %arg0, %c1_i32_6 : i32
    %17 = arith.extui %16 : i1 to i32
    %c0_i32_7 = arith.constant 0 : i32
    %18 = arith.cmpi ne, %17, %c0_i32_7 : i32
    scf.if %18 {
      %c0_8 = arith.constant 0 : index
      %c0_9 = arith.constant 0 : index
      %19 = vector.load %arg6[%c0_8, %c0_9] : memref<24x128xf32, #tpu.memory_space<vmem>>, vector<24x128xf32>
      %c0_10 = arith.constant 0 : index
      %c0_11 = arith.constant 0 : index
      %20 = vector.load %arg3[%c0_10, %c0_11] : memref<8x1xi32, #tpu.memory_space<vmem>>, vector<8x1xi32>
      %c0_i32_12 = arith.constant 0 : i32
      %c23_i32 = arith.constant 23 : i32
      %21 = vector.broadcast %c0_i32_12 : i32 to vector<8x1xi32>
      %22 = arith.maxsi %21, %20 : vector<8x1xi32>
      %23 = vector.broadcast %c23_i32 : i32 to vector<8x1xi32>
      %24 = arith.minsi %23, %22 : vector<8x1xi32>
      %25 = tpu.iota {dimensions = array<i32: 1>} : vector<8x24xi32>
      %26 = vector.broadcast %24 : vector<8x1xi32> to vector<8x24xi32>
      %27 = arith.cmpi eq, %26, %25 : vector<8x24xi32>
      %28 = arith.extui %27 : vector<8x24xi1> to vector<8x24xi32>
      %29 = arith.sitofp %28 : vector<8x24xi32> to vector<8x24xf32>
      %cst_13 = arith.constant dense<0.000000e+00> : vector<8x128xf32>
      %30 = tpu.matmul %29, %19, %cst_13 {dimension_numbers = #tpu.dot_dimension_numbers<[1], [0], [0], [1], [0, 0, 1, 1], [], []>, precision = #tpu.contract_precision<fp32>} : vector<8x24xf32>, vector<24x128xf32>, vector<8x128xf32> -> vector<8x128xf32>
      %c0_14 = arith.constant 0 : index
      %c0_15 = arith.constant 0 : index
      %31 = vector.load %arg9[%c0_14, %c0_15] : memref<8x128xf32, #tpu.memory_space<vmem>>, vector<8x128xf32>
      tpu.vector_store %arg9[%c0_14, %c0_15], %30 {strides = array<i32>} : memref<8x128xf32, #tpu.memory_space<vmem>>, vector<8x128xf32>,
    } else {
    }
    return
  }
  func.func @transform_0(%arg0: i32) -> (i32, i32) {
    %c0_i32 = arith.constant 0 : i32
    %0 = arith.minsi %arg0, %c0_i32 : i32
    %c0_i32_0 = arith.constant 0 : i32
    %c0_i32_1 = arith.constant 0 : i32
    return %0, %c0_i32_0 : i32, i32
  }
  func.func @transform_1(%arg0: i32) -> (i32, i32) {
    %c0_i32 = arith.constant 0 : i32
    %c0_i32_0 = arith.constant 0 : i32
    return %arg0, %c0_i32 : i32, i32
  }
  func.func @transform_2(%arg0: i32) -> (i32, i32) {
    %c0_i32 = arith.constant 0 : i32
    %0 = arith.minsi %arg0, %c0_i32 : i32
    %c0_i32_0 = arith.constant 0 : i32
    %c0_i32_1 = arith.constant 0 : i32
    return %0, %c0_i32_0 : i32, i32
  }
  func.func @transform_3(%arg0: i32) -> (i32, i32) {
    %c0_i32 = arith.constant 0 : i32
    %c0_i32_0 = arith.constant 0 : i32
    %c0_i32_1 = arith.constant 0 : i32
    return %c0_i32, %c0_i32_0 : i32, i32
  }
  func.func @transform_4(%arg0: i32) -> (i32, i32) {
    %c0_i32 = arith.constant 0 : i32
    %c0_i32_0 = arith.constant 0 : i32
    %c0_i32_1 = arith.constant 0 : i32
    return %c0_i32, %c0_i32_0 : i32, i32
  }
  func.func @transform_5(%arg0: i32) -> (i32, i32) {
    %c0_i32 = arith.constant 0 : i32
    %c0_i32_0 = arith.constant 0 : i32
    %c0_i32_1 = arith.constant 0 : i32
    return %c0_i32, %c0_i32_0 : i32, i32
  }
  func.func @transform_6(%arg0: i32) -> (i32, i32) {
    %c0_i32 = arith.constant 0 : i32
    %0 = arith.minsi %arg0, %c0_i32 : i32
    %c0_i32_0 = arith.constant 0 : i32
    %c0_i32_1 = arith.constant 0 : i32
    return %0, %c0_i32_0 : i32, i32
  }
  func.func @transform_7(%arg0: i32) -> (i32, i32) {
    %c0_i32 = arith.constant 0 : i32
    %c0_i32_0 = arith.constant 0 : i32
    return %arg0, %c0_i32 : i32, i32
  }
  func.func @transform_8(%arg0: i32) -> (i32, i32) {
    %c0_i32 = arith.constant 0 : i32
    %0 = arith.minsi %arg0, %c0_i32 : i32
    %c0_i32_0 = arith.constant 0 : i32
    %c0_i32_1 = arith.constant 0 : i32
    return %0, %c0_i32_0 : i32, i32
  }
}

</mosaic_0001>

<bundles_post_ra>
// kernel: tpu_custom_call.1
= control target key start
LH: loop header
LB: loop body
LE: loop exit
PB: predicated region body
PF: predicated region fallthrough
CT: control target
= control target key end

     0   :  { %s3528_s0 = inlined_call_operand.vmem [shape: s32[8,1], index: 0, kind: input, shape index: {}]   ;;  %s3529_s1 = inlined_call_operand.vmem [shape: s32[16,1], index: 1, kind: input, shape index: {}]   ;;  %s3530_s2 = inlined_call_operand.vmem [shape: s32[8,1], index: 2, kind: input, shape index: {}]   ;;  %s3531_s3 = inlined_call_operand.hbm [shape: f32[32,128], index: 3, kind: input, shape index: {}]   ;;  %s3532_s4 = inlined_call_operand.vmem [shape: f32[48,128], index: 4, kind: input, shape index: {}]   ;;  %s3533_s5 = inlined_call_operand.hbm [shape: f32[24,128], index: 5, kind: input, shape index: {}]   ;;  %s3534_s6 = inlined_call_operand.hbm [shape: f32[8,128], index: 6, kind: output, shape index: {0}]   ;;  %s3535_s7 = inlined_call_operand.hbm [shape: f32[16,128], index: 7, kind: output, shape index: {1}]   ;;  %s3536_s8 = inlined_call_operand.hbm [shape: f32[8,128], index: 8, kind: output, shape index: {2}]  }
   0x1   :  { %3551 = sst [smem:[#allocation25_spill]] %s3531_s3 }
   0x2   :  { %3552 = sst [smem:[#allocation26_spill]] %s3533_s5 }
   0x3   :  { %14 = vsyncpa [#allocation3], 0 }
   0x4   :  { %15 = vsyncpa [#allocation6], 0 }
   0x5   :  { %16 = vsyncpa [#allocation4], 0 }
   0x6   :  { %18 = vsyncpa [#allocation4 + $0x1], 0 }
   0x7   :  { %19 = vsyncpa [#allocation9], 0 }
   0x8   :  { %21 = vsyncpa [#allocation9 + $0x1], 0  ;;  %s3057_s27 = smov 0   ;;  %s3059_s28 = smov 0  }
   0x9   :  { %s3061_s29 = smov 0   ;;  %s3063_s30 = smov 0  }
   0xa   :  { %s3065_s9 = smov 0   ;;  %s3067_s10 = smov 0  }
   0xb   :  { %s3069_s11 = smov 0  }
   0xc LB: > { %3553 = sst [smem:[#allocation16_spill]] %s2971_s28  ;;  %s3093_s12 = sadd.s32 4294967295, %s2991_s11   ;;  %s2991_s11 = sphi %s3069_s11, %s3584_s11   ;;  %s2987_s10 = sphi %s3067_s10, %s3589_s10   ;;  %s2983_s9 = sphi %s3065_s9, %s3591_s9   ;;  %s2979_s30 = sphi %s3063_s30, %s3590_s30   ;;  %s2975_s29 = sphi %s3061_s29, %s3587_s29   ;;  %s2971_s28 = sphi %s3059_s28, %s3586_s28   ;;  %s2967_s27 = sphi %s3057_s27, %s3585_s27  }
   0xd   : > { %3554 = sst [smem:[#allocation17_spill]] %s2975_s29  ;;  %s3537_s13 = sadd.s32 4294967294, %s2991_s11  }
   0xe   : > { %3555 = sst [smem:[#allocation18_spill]] %s2979_s30  ;;  %s3097_s14 = sadd.s32 1, %s2991_s11  }
   0xf   : > { %3556 = sst [smem:[#allocation19_spill]] %s2987_s10  ;;  %p180_p0 = scmp.lt.s32.totalorder %s2991_s11, 0 }
  0x10   : > { %3557 = sst [smem:[#allocation20_spill]] %s3097_s14  ;;  %p182_p1 = scmp.lt.s32.totalorder %s3097_s14, 0 }
  0x11   : > { %s187_s15 = sadd.s32 1, %s2987_s10  ;;  %p197_p2 = scmp.ne.s32.totalorder %s2987_s10, %s2983_s9 }
  0x12   : > { %s181_s16 = scalar_select %p180_p0, %s2991_s11, 0 }
  0x13   : > { %s183_s17 = scalar_select %p182_p1, %s3097_s14, 0 }
  0x14   : > { %p198_p3 = scmp.eq.s32.totalorder %s3093_s12, 1  ;;  %p203_p4 = scmp.ne.s32.totalorder %s2983_s9, %s2979_s30 }
  0x15   : > { %s184_s18 = ssub.s32 %s181_s16, %s183_s17  ;;  %p204_p7 = scmp.eq.s32.totalorder %s3537_s13, 1 }
  0x16   : > { %p185_p5 = scmp.eq.s32.totalorder %s184_s18, 0  ;;  %p3111_p6 = por %p198_p3, %p197_p2 }
  0x17   : > { %s210_s20 = ssub.s32 %s2991_s11, %s3097_s14  ;;  %p3122_p8 = por %p204_p7, %p203_p4 }
  0x18   : > { %s3558_s19 = scalar_select %p3111_p6, 1, 0 }
  0x19   : > { %s3120_s21 = scalar_select %p185_p5, %s2987_s10, %s187_s15  }
  0x1a   : > { %s3560_s22 = scalar_select %p3122_p8, 1, 0 }
  0x1b   : > { %3559 = sst [smem:[#allocation21_spill]] %s3120_s21  ;;  %p211_p9 = scmp.eq.s32.totalorder %s210_s20, 0 }
  0x1c   : > { %3561 = sst [smem:[#allocation22_spill]] %s3560_s22  ;;  %s213_s23 = sadd.s32 1, %s2975_s29 }
  0x1d   : > { %p223_p10 = scmp.ne.s32.totalorder %s2975_s29, %s2971_s28  ;;  %p229_p12 = scmp.ne.s32.totalorder %s2971_s28, %s2967_s27 }
  0x1e   : > { %s3130_s24 = scalar_select %p211_p9, %s2975_s29, %s213_s23  }
  0x1f   : > { %p3134_p11 = por %p223_p10, %p198_p3  ;;  %p2184_p13 = scmp.ge.s32.totalorder %s2991_s11, 1 }
  0x20   : > { %3562 = sst [smem:[#allocation23_spill]] %s3130_s24  ;;  %p267_p0 = scmp.lt.s32.totalorder %s2991_s11, 3 }
  0x21   : > { %s3563_s25 = scalar_select %p3134_p11, 1, 0 }
  0x22   : > { %p3142_p1 = por %p229_p12, %p204_p7  ;;  %p3146_p2 = pnand %p2184_p13, %p267_p0 }
  0x23   : > { %p3540_p4 = scmp.eq.s32.totalorder %s3093_s12, 0  ;;  %s2993_s16 = smov [#allocation2]  }
  0x24   : > { %s3564_s26 = scalar_select %p3142_p1, 1, 0 }
  0x25   : > { %s3566_s15 = scalar_select %p3146_p2, 1, 0 }
  0x26   : > { %3565 = sst [smem:[#allocation24_spill]] %s3564_s26  ;;  %p2680_p5 = pneg %p3146_p2 }
  0x27   : > { %s279_s17 = sshll.u32 %s2993_s16, 4  ;;  %s2994_s18 = smov [#allocation5]   ;;  %s280_s17 = int_to_ptr.vmem [resolvable:$true] %s279_s17 }
  0x28   : > { %p3155_p3 = pnand %p3540_p4, %p2680_p5  ;;  %s295_s20 = sshll.u32 %s2994_s18, 4  ;;  %s3159_s20 = int_to_ptr.vmem [resolvable:$true] %s295_s20 }
  0x29   : > { %s3568_s3 = sld [smem:[#allocation25_spill]] }
  0x2a   : > { %p2779_p9 = pneg %p3155_p3 }
  0x2f   : > { %s2777_s21 = scalar_lea.hbm %s3568_s3, 512 }
  0x30   : > { %p2778_p7 = scmp.ne.s32.totalorder %s3568_s3, %s2777_s21  ;;  %p2784_p13 = scmp.lt.u32.totalorder %s2777_s21, %s3568_s3 }
  0x32   : > { %p2780_p10 = pnand %p2779_p9, %p2778_p7 }
  0x34   : > { %p2781_p12 = pneg %p2780_p10 }
  0x36   : > { %p2786_p0 = pnand %p2784_p13, %p2781_p12 }
  0x38   : > { %2789 = shalt.err (!%p2786_p0)
}
  0x39   : > { %s2790_s18 = scalar_lea.vmem %s280_s17, 512  ;;  %p2798_p8 = scmp.lt.s32.totalorder %s280_s17, %s280_s17 }
  0x3a   : > { %p2791_p5 = scmp.ne.s32.totalorder %s280_s17, %s2790_s18  ;;  %p2799_p6 = scmp.lt.s32.totalorder %s2790_s18, %s2790_s18 }
  0x3c   : > { %p2793_p4 = pnand %p2791_p5, %p2779_p9  ;;  %p2800_p11 = por %p2799_p6, %p2798_p8 }
  0x3e   : > { %p2794_p1 = pneg %p2793_p4 }
  0x40   : > { %p2801_p2 = pnand %p2800_p11, %p2794_p1 }
  0x42   : > { %2804 = shalt.err (!%p2801_p2)
}
  0x43   : > { %s2995_s10 = smov 128   ;;  %s2996_s13 = smov 8  }
  0x44   : > { %2683 = dma.hbm_to_vmem [thread:$0]  (!%p3155_p3), %s3568_s3, 512, %s280_s17, [#allocation3], %s2995_s10, %s2995_s10, %s2996_s13  }
  0x45   : > { %s3569_s5 = sld [smem:[#allocation26_spill]] }
  0x4b   : > { %s2805_s16 = scalar_lea.hbm %s3569_s5, 384 }
  0x4c   : > { %p2806_p4 = scmp.ne.s32.totalorder %s3569_s5, %s2805_s16  ;;  %p2812_p11 = scmp.lt.u32.totalorder %s2805_s16, %s3569_s5 }
  0x4e   : > { %p2808_p6 = pnand %p2806_p4, %p2779_p9 }
  0x50   : > { %p2809_p8 = pneg %p2808_p6 }
  0x52   : > { %p2814_p1 = pnand %p2812_p11, %p2809_p8 }
  0x54   : > { %2817 = shalt.err (!%p2814_p1)
}
  0x55   : > { %s2818_s17 = scalar_lea.vmem %s3159_s20, 384  ;;  %p2826_p12 = scmp.lt.s32.totalorder %s3159_s20, %s3159_s20 }
  0x56   : > { %p2819_p2 = scmp.ne.s32.totalorder %s3159_s20, %s2818_s17  ;;  %p2827_p13 = scmp.lt.s32.totalorder %s2818_s17, %s2818_s17 }
  0x58   : > { %p2821_p7 = pnand %p2819_p2, %p2779_p9  ;;  %p2828_p0 = por %p2827_p13, %p2826_p12 }
  0x5a   : > { %p2822_p10 = pneg %p2821_p7 }
  0x5c   : > { %p2829_p5 = pnand %p2828_p0, %p2822_p10 }
  0x5e   : > { %2832 = shalt.err (!%p2829_p5)
}
  0x5f   : > { %2686 = dma.hbm_to_vmem [thread:$0]  (!%p3155_p3), %s3569_s5, 384, %s3159_s20, [#allocation6], %s2995_s10, %s2995_s10, %s2996_s13  }
  0x60   : > { %p3570_p4 = scmp.ne.s32.totalorder %s3566_s15, 0 }
  0x61   : > { %p3571_p6 = scmp.eq.s32.totalorder (!%p3570_p4), %s3093_s12, 0 }
  0x62   : > { %340 = sbr.rel (%p3570_p4) target bundleno = 1181 (0x49d), region = 44 }
  0x69   : > { %2946 = dma.done.wait (%p3571_p6), [#allocation3], 512   ;;  %p3572_p9 = pmov %p3571_p6 }
  0x6a   : > { %p3573_p8 = pmov %p3571_p6 }
  0x6b   : > { %2948 = vsyncadd (%p3572_p9), [#allocation3], 4294966784 }
  0x6c   : > { %2950 = dma.done.wait (%p3573_p8), [#allocation6], 384   ;;  %p3574_p11 = pmov %p3571_p6 }
  0x6d   : > { %s3548_s26 = sand.u32 1, %s2983_s9   ;;  %s389_s15 = sand.u32 1, %s2971_s28  }
  0x6e   : > { %2952 = vsyncadd (%p3574_p11), [#allocation6], 4294966912  ;;  %s3222_s27 = sshll.u32 %s3548_s26, 3  ;;  %s3224_s20 = sshll.u32 %s389_s15, 3 }
  0x6f   : > { %p399_p3 = scmp.lt.s32.totalorder %s3093_s12, 0  ;;  %p407_p1 = scmp.lt.s32.totalorder %s3093_s12, 1 }
  0x70   : > { %s384_s5 = scalar_lea.vmem [#allocation7], %s3222_s27  ;;  %s391_s28 = scalar_lea.vmem [#allocation8], %s3224_s20 }
  0x71   : > { %s3229_s10 = scalar_select %p399_p3, %s3093_s12, 0 }
  0x72   : > { %s408_s13 = scalar_select %p407_p1, %s3093_s12, 1 }
  0x73   : > { %s402_s29 = scalar_select %p399_p3, %s3229_s10, 0 }
  0x74   : > { %s2198_s21 = sshll.u32 %s408_s13, 3  ;;  %s398_s30 = scalar_lea.vmem [#allocation10], %s3222_s27 }
  0x75   : > { %s2197_s24 = sshll.u32 %s402_s29, 3  ;;  %s3236_s18 = scalar_lea.vmem %s3529_s1, %s2198_s21 }
  0x76   : > { %s404_s22 = scalar_lea.vmem %s3528_s0, %s2197_s24  ;;  %s3244_s3 = scalar_lea.vmem %s3530_s2, %s2197_s24 }
  0x77   : > { %p2203_p2 = scmp.ge.s32.totalorder %s3093_s12, 1 }
  0x78   : > { %v431_v0 = vld [vmem:[%s404_s22] sm:$0xff] (!%p2203_p2)  ;;  %v428_v2 = vld [vmem:[#allocation2 + $0x8] sm:$0xff] (!%p2203_p2)  ;;  %v2997_v3 = vmov (!%p2203_p2), 0   ;;  %v2998_v4 = vmov (!%p2203_p2), 0.0|0.0   ;;  %v429_v10 = vld [vmem:[#allocation2 + $0x10] sm:$0xff] (!%p2203_p2)  ;;  %vm2999_vm2 = vmmov (!%p2203_p2), 0   ;;  %v436_v38 = vlaneseq (!%p2203_p2) }
  0x79   : > { %426 = sbr.rel (%p2203_p2) target bundleno = 495 (0x1ef), region = 56  ;;  %v427_v1 = vld [vmem:[#allocation2] sm:$0xff] (!%p2203_p2)  ;;  %2774 = vset.pattern.permute.xlu0 (!%p2203_p2), %v2997_v3  ;;  %vm432_vm0 = vcmp.gt.s32.totalorder (!%p2203_p2), %v431_v0, 0  ;;  %2549 = vmatprep.subr.bf16.mxu0 (!%p2203_p2), %v2998_v4  ;;  %v452_v6 = vand.u32 (!%p2203_p2), 4294901760, %v428_v2  ;;  %v430_v11 = vld [vmem:[#allocation2 + $0x18] sm:$0xff] (!%p2203_p2)  ;;  %v455_v12 = vand.u32 (!%p2203_p2), 4294901760, %v429_v10 }
  0x7a   : > { %v449_v5 = vand.u32 (!%p2203_p2), 4294901760, %v427_v1  ;;  %v433_v7 = vsel (!%p2203_p2), %vm432_vm0, %v431_v0, 0  ;;  %2531 = vmatprep.subr.bf16.mxu1 (!%p2203_p2), %v2998_v4  ;;  %v458_v13 = vand.u32 (!%p2203_p2), 4294901760, %v430_v11  ;;  %v3000_v19 = vmov (!%p2203_p2), 0.0  }
  0x7b   : > { %vm434_vm1 = vcmp.lt.s32.totalorder (!%p2203_p2), %v433_v7, 31  ;;  %v536_v15 = vsub.f32 (!%p2203_p2), %v428_v2, %v452_v6  ;;  %v543_v17 = vsub.f32 (!%p2203_p2), %v429_v10, %v455_v12  ;;  %2362 = vmatprep.mubr.msk.f32.mxu0 (!%p2203_p2), %vm2999_vm2, %v3000_v19  ;;  %2329 = vmatprep.mubr.msk.f32.mxu1 (!%p2203_p2), %vm2999_vm2, %v3000_v19  ;;  %v437_v39 = vand.u32 (!%p2203_p2), 127, %v436_v38 }
  0x7c   : > { %v3254_v8 = vpack.c.bf16 (!%p2203_p2), %v452_v6, %v449_v5  ;;  %v435_v9 = vsel (!%p2203_p2), %vm434_vm1, %v433_v7, 31  ;;  %v529_v14 = vsub.f32 (!%p2203_p2), %v427_v1, %v449_v5  ;;  %v2535_v16 = vpack.c.bf16 (!%p2203_p2), %v458_v13, %v455_v12 }
  0x7d   : > { %439 = vperm.xlu0 (!%p2203_p2), %2774, %v435_v9   ;;  %v550_v18 = vsub.f32 (!%p2203_p2), %v430_v11, %v458_v13  ;;  %v537_v21 = vand.u32 (!%p2203_p2), 4294901760, %v536_v15  ;;  %v544_v27 = vand.u32 (!%p2203_p2), 4294901760, %v543_v17  ;;  %vm444_vm3 = vcmask (!%p2203_p2), 261120  }
  0x7e   : > { %2551 = vmatpush3.bf16.msra.mxu0 (!%p2203_p2), %v3254_v8  ;;  %2533 = vmatpush3.bf16.msra.mxu1 (!%p2203_p2), %v3254_v8  ;;  %v530_v20 = vand.u32 (!%p2203_p2), 4294901760, %v529_v14  ;;  %v2544_v36 = vpack.c.bf16 (!%p2203_p2), %v536_v15, %v529_v14 }
  0x7f   : > { %2552 = vmatprep.subr.bf16.mxu0 (!%p2203_p2), %v2998_v4  ;;  %2534 = vmatprep.subr.bf16.mxu1 (!%p2203_p2), %v2998_v4  ;;  %v538_v24 = vsub.f32 (!%p2203_p2), %v536_v15, %v537_v21  ;;  %v551_v28 = vand.u32 (!%p2203_p2), 4294901760, %v550_v18  ;;  %v545_v31 = vsub.f32 (!%p2203_p2), %v543_v17, %v544_v27  ;;  %v2547_v37 = vpack.c.bf16 (!%p2203_p2), %v550_v18, %v543_v17 }
  0x80   : > { %v2556_v22 = vpack.c.bf16 %v537_v21, %v530_v20  ;;  %v531_v23 = vsub.f32 %v529_v14, %v530_v20 }
  0x81   : > { %v539_v26 = vand.u32 4294901760, %v538_v24  ;;  %v2559_v30 = vpack.c.bf16 %v551_v28, %v544_v27  ;;  %v552_v32 = vsub.f32 %v550_v18, %v551_v28  ;;  %v546_v33 = vand.u32 4294901760, %v545_v31 }
  0x82   : > { %2554 = vmatpush3.bf16.msra.mxu0 %v2535_v16  ;;  %2536 = vmatpush3.bf16.msra.mxu1 %v2535_v16  ;;  %v532_v25 = vand.u32 4294901760, %v531_v23 }
  0x83   : > { %2555 = vmatprep.subr.bf16.mxu0 %v2998_v4  ;;  %2537 = vmatprep.subr.bf16.mxu1 %v2998_v4  ;;  %v553_v34 = vand.u32 4294901760, %v552_v32 }
  0x84   : > { %v2538_v29 = vpack.c.bf16 %v539_v26, %v532_v25 }
  0x85   : > { %v2541_v35 = vpack.c.bf16 %v553_v34, %v546_v33 }
  0xfc   : > { %v440_v40 = vpop.permute.xlu0 %439 }
  0xfd   : > { %vm441_vm4 = vcmp.eq.s32.totalorder %v440_v40, %v437_v39 }
  0xfe   : > { %v2204_v41 = vsel %vm441_vm4, 1.0, %v3000_v19 }
  0xff   : > { %v446_v42 = vsel %vm444_vm3, %v2204_v41, 0 }
 0x100   : > { %v518_v43 = vsub.f32 %v446_v42, %v446_v42 }
 0x102   : > { %v519_v44 = vand.u32 4294901760, %v518_v43 }
 0x104   : > { %2363 = vmatmul.mubr.f32.vlgmr.msra.gmra.mrb[0].mxu0 %v519_v44  ;;  %v520_v45 = vsub.f32 %v518_v43, %v519_v44 }
 0x105   : > { %2557 = vmatpush3.bf16.msra.mxu0 %v2556_v22  ;;  %2373 = vmatprep.mubr.msk.f32.mxu0 %vm2999_vm2, %v3000_v19 }
 0x106   : > { %v521_v46 = vand.u32 4294901760, %v520_v45  ;;  %2558 = vmatprep.subr.bf16.mxu0 %v2998_v4 }
 0x108   : > { %2330 = vmatmul.mubr.f32.vlgmr.msra.gmra.mrb[0].mxu1 %v521_v46 }
 0x109   : > { %2539 = vmatpush3.bf16.msra.mxu1 %v2538_v29  ;;  %2560 = vmatpush3.bf16.msra.mxu0 %v2559_v30 }
 0x10a   : > { %2540 = vmatprep.subr.bf16.mxu1 %v2998_v4  ;;  %2561 = vmatprep.subr.bf16.mxu0 %v2998_v4 }
 0x10b   : > { %2340 = vmatprep.mubr.msk.f32.mxu1 %vm2999_vm2, %v3000_v19 }
 0x10c   : > { %2374 = vmatmul.mubr.msk.f32.vlgmr.msra.gmra.mrb[0].mxu0 %vm444_vm3, %v2204_v41 }
 0x10d   : > { %2542 = vmatpush3.bf16.msra.mxu1 %v2541_v35  ;;  %2563 = vmatpush3.bf16.msra.mxu0 %v3254_v8 }
 0x10e   : > { %2543 = vmatprep.subr.bf16.mxu1 %v2998_v4  ;;  %2564 = vmatprep.subr.bf16.mxu0 %v2998_v4 }
 0x10f   : > { %2384 = vmatprep.mubr.msk.f32.mxu0 %vm2999_vm2, %v3000_v19 }
 0x110   : > { %2341 = vmatmul.mubr.msk.f32.vlgmr.msra.gmra.mrb[0].mxu1 %vm444_vm3, %v2204_v41 }
 0x111   : > { %2545 = vmatpush3.bf16.msra.mxu1 %v2544_v36  ;;  %2566 = vmatpush3.bf16.msra.mxu0 %v2535_v16 }
 0x112   : > { %2546 = vmatprep.subr.bf16.mxu1 %v2998_v4  ;;  %2351 = vmatprep.mubr.msk.f32.mxu1 %vm2999_vm2, %v3000_v19 }
 0x114   : > { %2385 = vmatmul.mubr.msk.f32.vlgmr.msra.gmra.mrb[0].mxu0 %vm444_vm3, %v2204_v41 }
 0x115   : > { %2548 = vmatpush3.bf16.msra.mxu1 %v2547_v37 }
 0x118   : > { %2352 = vmatmul.mubr.f32.vlgmr.msra.gmra.mrb[0].mxu1 %v518_v43 }
 0x1e7   : > { %v929_v47 = vpop.f32.mrb[0].mxu0 }
 0x1e8   : > { %v2386_v48 = vpop.f32.mrb[1].mxu0 }
 0x1eb   : > { %v694_v49 = vpop.f32.mrb[0].mxu1 }
 0x1ec   : > { %v2639_v50 = vadd.f32 %v929_v47, %v694_v49  ;;  %v2353_v51 = vpop.f32.mrb[1].mxu1 }
 0x1ee   : > { %933 = vst [vmem:[%s384_s5] sm:$0xff] %v2639_v50 }
 0x1ef PF: > { %v940_v52 = vld [vmem:[%s3236_s18] sm:$0xff]  ;;  %v935_v54 = vld [vmem:[%s3532_s4 + $0x8] sm:$0xff]  ;;  %v3001_v55 = vmov 0   ;;  %v3002_v56 = vmov 0.0|0.0   ;;  %v936_v59 = vld [vmem:[%s3532_s4 + $0x10] sm:$0xff]  ;;  %vm3003_vm7 = vmmov 0   ;;  %v945_v42 = vlaneseq }
 0x1f0   : > { %v934_v53 = vld [vmem:[%s3532_s4] sm:$0xff]  ;;  %2775 = vset.pattern.permute.xlu0 %v3001_v55  ;;  %vm941_vm5 = vcmp.gt.s32.totalorder %v940_v52, 0  ;;  %2594 = vmatprep.subr.bf16.mxu0 %v3002_v56  ;;  %v961_v58 = vand.u32 4294901760, %v935_v54  ;;  %v937_v60 = vld [vmem:[%s3532_s4 + $0x18] sm:$0xff]  ;;  %v964_v62 = vand.u32 4294901760, %v936_v59  ;;  %v939_v4 = vld [vmem:[%s3532_s4 + $0x28] sm:$0xff] }
 0x1f1   : > { %v958_v57 = vand.u32 4294901760, %v934_v53  ;;  %v942_v61 = vsel %vm941_vm5, %v940_v52, 0  ;;  %2567 = vmatprep.subr.bf16.mxu1 %v3002_v56  ;;  %v967_v63 = vand.u32 4294901760, %v937_v60  ;;  %v938_v3 = vld [vmem:[%s3532_s4 + $0x20] sm:$0xff]  ;;  %v973_v8 = vand.u32 4294901760, %v939_v4 }
 0x1f2   : > { %vm943_vm6 = vcmp.lt.s32.totalorder %v942_v61, 47  ;;  %v3300_v2 = vsub.f32 %v935_v54, %v961_v58  ;;  %v970_v7 = vand.u32 4294901760, %v938_v3  ;;  %v3314_v9 = vsub.f32 %v936_v59, %v964_v62  ;;  %v1472_v59 = vld [vmem:[#allocation5] sm:$0xff] (!%p2203_p2) }
 0x1f3   : > { %v3296_v0 = vpack.c.bf16 %v961_v58, %v958_v57  ;;  %v3298_v1 = vsub.f32 %v934_v53, %v958_v57  ;;  %v944_v5 = vsel %vm943_vm6, %v942_v61, 47  ;;  %v3309_v6 = vpack.c.bf16 %v967_v63, %v964_v62  ;;  %v1475_v57 = vld [vmem:[%s3244_s3] sm:$0xff] (!%p2203_p2) }
 0x1f4   : > { %948 = vperm.xlu0 %2775, %v944_v5   ;;  %v3316_v10 = vsub.f32 %v937_v60, %v967_v63  ;;  %v3318_v11 = vsub.f32 %v938_v3, %v970_v7  ;;  %v3320_v12 = vsub.f32 %v939_v4, %v973_v8  ;;  %v3323_v13 = vpack.c.bf16 %v973_v8, %v970_v7  ;;  %v1473_v60 = vld [vmem:[#allocation5 + $0x8] sm:$0xff] (!%p2203_p2)  ;;  %v1474_v5 = vld [vmem:[#allocation5 + $0x10] sm:$0xff] (!%p2203_p2) }
 0x1f5   : > { %2596 = vmatpush3.bf16.msra.mxu0 %v3296_v0  ;;  %2569 = vmatpush3.bf16.msra.mxu1 %v3296_v0  ;;  %v1041_v14 = vand.u32 4294901760, %v3298_v1  ;;  %v1048_v15 = vand.u32 4294901760, %v3300_v2  ;;  %v3004_v16 = vmov 0.0   ;;  %v1055_v22 = vand.u32 4294901760, %v3314_v9 }
 0x1f6   : > { %2597 = vmatprep.subr.bf16.mxu0 %v3002_v56  ;;  %2570 = vmatprep.subr.bf16.mxu1 %v3002_v56  ;;  %v1062_v23 = vand.u32 4294901760, %v3316_v10  ;;  %v1069_v30 = vand.u32 4294901760, %v3318_v11  ;;  %v1076_v31 = vand.u32 4294901760, %v3320_v12  ;;  %v2586_v39 = vpack.c.bf16 %v3300_v2, %v3298_v1 }
 0x1f7   : > { %2444 = vmatprep.mubr.msk.f32.mxu0 %vm3003_vm7, %v3004_v16  ;;  %v2604_v17 = vpack.c.bf16 %v1048_v15, %v1041_v14  ;;  %v1042_v18 = vsub.f32 %v3298_v1, %v1041_v14  ;;  %v1049_v19 = vsub.f32 %v3300_v2, %v1048_v15  ;;  %2399 = vmatprep.mubr.msk.f32.mxu1 %vm3003_vm7, %v3004_v16  ;;  %v3354_v43 = vand.u32 127, %v945_v42 }
 0x1f8   : > { %v2607_v25 = vpack.c.bf16 %v1062_v23, %v1055_v22  ;;  %v1056_v26 = vsub.f32 %v3314_v9, %v1055_v22  ;;  %v1063_v27 = vsub.f32 %v3316_v10, %v1062_v23  ;;  %v2610_v33 = vpack.c.bf16 %v1076_v31, %v1069_v30 }
 0x1f9   : > { %2599 = vmatpush3.bf16.msra.mxu0 %v3309_v6  ;;  %2572 = vmatpush3.bf16.msra.mxu1 %v3309_v6  ;;  %v1043_v20 = vand.u32 4294901760, %v1042_v18  ;;  %v1050_v21 = vand.u32 4294901760, %v1049_v19  ;;  %v1070_v34 = vsub.f32 %v3318_v11, %v1069_v30  ;;  %v1077_v35 = vsub.f32 %v3320_v12, %v1076_v31 }
 0x1fa   : > { %2600 = vmatprep.subr.bf16.mxu0 %v3002_v56  ;;  %2573 = vmatprep.subr.bf16.mxu1 %v3002_v56  ;;  %v1057_v28 = vand.u32 4294901760, %v1056_v26  ;;  %v1064_v29 = vand.u32 4294901760, %v1063_v27  ;;  %v2589_v40 = vpack.c.bf16 %v3316_v10, %v3314_v9  ;;  %v2592_v41 = vpack.c.bf16 %v3320_v12, %v3318_v11 }
 0x1fb   : > { %v2577_v24 = vpack.c.bf16 %v1050_v21, %v1043_v20  ;;  %v1071_v36 = vand.u32 4294901760, %v1070_v34  ;;  %v1078_v37 = vand.u32 4294901760, %v1077_v35  ;;  %vm953_vm8 = vcmask 392192  }
 0x1fc   : > { %v2580_v32 = vpack.c.bf16 %v1064_v29, %v1057_v28  ;;  %v3005_v58 = vmov (!%p2203_p2), 0   ;;  %vm1476_vm10 = vcmp.gt.s32.totalorder (!%p2203_p2), %v1475_v57, 0  ;;  %v1491_v61 = vand.u32 (!%p2203_p2), 4294901760, %v1472_v59 }
 0x1fd   : > { %2602 = vmatpush3.bf16.msra.mxu0 %v3323_v13  ;;  %2575 = vmatpush3.bf16.msra.mxu1 %v3323_v13  ;;  %v2583_v38 = vpack.c.bf16 %v1078_v37, %v1071_v36  ;;  %v1494_v62 = vand.u32 (!%p2203_p2), 4294901760, %v1473_v60  ;;  %v3006_v1 = vmov (!%p2203_p2), 0.0|0.0   ;;  %v3007_v4 = vmov (!%p2203_p2), 0.0  }
 0x1fe   : > { %2603 = vmatprep.subr.bf16.mxu0 %v3002_v56  ;;  %2576 = vmatprep.subr.bf16.mxu1 %v3002_v56  ;;  %v1570_v2 = vsub.f32 (!%p2203_p2), %v1472_v59, %v1491_v61  ;;  %vm3008_vm12 = vmmov (!%p2203_p2), 0   ;;  %vm1486_vm13 = vcmask (!%p2203_p2), 195584  }
 0x1ff   : > { %2776 = vset.pattern.permute.xlu0 (!%p2203_p2), %v3005_v58  ;;  %v1577_v3 = vsub.f32 (!%p2203_p2), %v1473_v60, %v1494_v62 }
 0x200   : > { %v1571_v7 = vand.u32 (!%p2203_p2), 4294901760, %v1570_v2 }
 0x201   : > { %v1578_v8 = vand.u32 (!%p2203_p2), 4294901760, %v1577_v3  ;;  %v2628_v15 = vpack.c.bf16 (!%p2203_p2), %v1577_v3, %v1570_v2 }
 0x202   : > { %v1572_v10 = vsub.f32 (!%p2203_p2), %v1570_v2, %v1571_v7 }
 0x203   : > { %v2634_v9 = vpack.c.bf16 (!%p2203_p2), %v1578_v8, %v1571_v7  ;;  %v1579_v11 = vsub.f32 (!%p2203_p2), %v1577_v3, %v1578_v8 }
 0x204   : > { %v1573_v12 = vand.u32 (!%p2203_p2), 4294901760, %v1572_v10 }
 0x273   : > { %v949_v44 = vpop.permute.xlu0 %948 }
 0x274   : > { %vm950_vm9 = vcmp.eq.s32.totalorder %v949_v44, %v3354_v43 }
 0x275   : > { %v2208_v45 = vsel %vm950_vm9, 1.0, %v3004_v16 }
 0x276   : > { %v955_v46 = vsel %vm953_vm8, %v2208_v45, 0 }
 0x277   : > { %v1029_v47 = vsub.f32 %v955_v46, %v955_v46 }
 0x279   : > { %v1030_v48 = vand.u32 4294901760, %v1029_v47 }
 0x27b   : > { %2445 = vmatmul.mubr.f32.vlgmr.msra.gmra.mrb[0].mxu0 %v1030_v48  ;;  %v1031_v49 = vsub.f32 %v1029_v47, %v1030_v48 }
 0x27c   : > { %2605 = vmatpush3.bf16.msra.mxu0 %v2604_v17  ;;  %2459 = vmatprep.mubr.msk.f32.mxu0 %vm3003_vm7, %v3004_v16 }
 0x27d   : > { %2606 = vmatprep.subr.bf16.mxu0 %v3002_v56  ;;  %v1032_v50 = vand.u32 4294901760, %v1031_v49 }
 0x27f   : > { %2400 = vmatmul.mubr.f32.vlgmr.msra.gmra.mrb[0].mxu1 %v1032_v50 }
 0x280   : > { %2578 = vmatpush3.bf16.msra.mxu1 %v2577_v24  ;;  %2608 = vmatpush3.bf16.msra.mxu0 %v2607_v25 }
 0x281   : > { %2579 = vmatprep.subr.bf16.mxu1 %v3002_v56  ;;  %2609 = vmatprep.subr.bf16.mxu0 %v3002_v56 }
 0x282   : > { %2414 = vmatprep.mubr.msk.f32.mxu1 %vm3003_vm7, %v3004_v16 }
 0x284   : > { %2581 = vmatpush3.bf16.msra.mxu1 %v2580_v32  ;;  %2611 = vmatpush3.bf16.msra.mxu0 %v2610_v33 }
 0x285   : > { %2582 = vmatprep.subr.bf16.mxu1 %v3002_v56  ;;  %2612 = vmatprep.subr.bf16.mxu0 %v3002_v56 }
 0x287   : > { %2460 = vmatmul.mubr.msk.f32.vlgmr.msra.gmra.mrb[0].mxu0 %vm953_vm8, %v2208_v45 }
 0x288   : > { %2584 = vmatpush3.bf16.msra.mxu1 %v2583_v38  ;;  %2614 = vmatpush3.bf16.msra.mxu0 %v3296_v0  ;;  %v2622_v0 = vpack.c.bf16 (!%p2203_p2), %v1494_v62, %v1491_v61 }
 0x289   : > { %2585 = vmatprep.subr.bf16.mxu1 %v3002_v56  ;;  %2615 = vmatprep.subr.bf16.mxu0 %v3002_v56 }
 0x28a   : > { %2474 = vmatprep.mubr.msk.f32.mxu0 %vm3003_vm7, %v3004_v16 }
 0x28b   : > { %2415 = vmatmul.mubr.msk.f32.vlgmr.msra.gmra.mrb[0].mxu1 %vm953_vm8, %v2208_v45 }
 0x28c   : > { %2587 = vmatpush3.bf16.msra.mxu1 %v2586_v39  ;;  %2617 = vmatpush3.bf16.msra.mxu0 %v3309_v6  ;;  %v1497_v6 = vand.u32 (!%p2203_p2), 4294901760, %v1474_v5 }
 0x28d   : > { %2588 = vmatprep.subr.bf16.mxu1 %v3002_v56  ;;  %2618 = vmatprep.subr.bf16.mxu0 %v3002_v56 }
 0x28e   : > { %2429 = vmatprep.mubr.msk.f32.mxu1 %vm3003_vm7, %v3004_v16  ;;  %v1584_v17 = vsub.f32 (!%p2203_p2), %v1474_v5, %v1497_v6 }
 0x290   : > { %2590 = vmatpush3.bf16.msra.mxu1 %v2589_v40  ;;  %2620 = vmatpush3.bf16.msra.mxu0 %v3323_v13  ;;  %v1580_v13 = vand.u32 (!%p2203_p2), 4294901760, %v1579_v11  ;;  %v1585_v21 = vand.u32 (!%p2203_p2), 4294901760, %v1584_v17 }
 0x291   : > { %2591 = vmatprep.subr.bf16.mxu1 %v3002_v56  ;;  %v1477_v56 = vsel (!%p2203_p2), %vm1476_vm10, %v1475_v57, 0  ;;  %2630 = vmatprep.subr.bf16.mxu0 (!%p2203_p2), %v3006_v1 }
 0x292   : > { %vm1478_vm11 = vcmp.lt.s32.totalorder (!%p2203_p2), %v1477_v56, 23  ;;  %v2625_v14 = vpack.c.bf16 (!%p2203_p2), %v1580_v13, %v1573_v12  ;;  %v1586_v24 = vsub.f32 (!%p2203_p2), %v1584_v17, %v1585_v21 }
 0x293   : > { %2475 = vmatmul.mubr.msk.f32.vlgmr.msra.gmra.mrb[0].mxu0 %vm953_vm8, %v2208_v45  ;;  %v1479_v63 = vsel (!%p2203_p2), %vm1478_vm11, %v1477_v56, 23 }
 0x294   : > { %2593 = vmatpush3.bf16.msra.mxu1 %v2592_v41  ;;  %1481 = vperm.xlu0 (!%p2203_p2), %2776, %v1479_v63   ;;  %v1587_v26 = vand.u32 (!%p2203_p2), 4294901760, %v1586_v24 }
 0x295   : > { %2621 = vmatprep.subr.bf16.mxu1 (!%p2203_p2), %v3006_v1  ;;  %2632 = vmatpush3.bf16.msra.mxu0 (!%p2203_p2), %v2622_v0 }
 0x296   : > { %2508 = vmatprep.subr.mxu0 (!%p2203_p2), %v3007_v4  ;;  %2510 = vmatprep.mubr.msk.f32.mxu0 (!%p2203_p2), %vm3008_vm12, %v3007_v4 }
 0x297   : > { %2430 = vmatmul.mubr.f32.vlgmr.msra.gmra.mrb[0].mxu1 %v1029_v47 }
 0x298   : > { %2623 = vmatpush3.bf16.msra.mxu1 (!%p2203_p2), %v2622_v0  ;;  %2483 = vmatprep.mubr.msk.f32.mxu1 (!%p2203_p2), %vm3008_vm12, %v3007_v4 }
 0x299   : > { %2481 = vmatprep.subr.mxu1 (!%p2203_p2), %v3007_v4  ;;  %2509 = vmatpush3.msra.mxu0 (!%p2203_p2), %v1497_v6 }
 0x29a   : > { %2633 = vmatprep.subr.bf16.mxu0 (!%p2203_p2), %v3006_v1 }
 0x29c   : > { %2482 = vmatpush3.msra.mxu1 (!%p2203_p2), %v1497_v6 }
 0x29d   : > { %2624 = vmatprep.subr.bf16.mxu1 (!%p2203_p2), %v3006_v1 }
 0x313   : > { %v1482_v16 = vpop.permute.xlu0 (!%p2203_p2), %1481 }
 0x314   : > { %vm1483_vm14 = vcmp.eq.s32.totalorder (!%p2203_p2), %v1482_v16, %v3354_v43 }
 0x315   : > { %v2213_v18 = vsel (!%p2203_p2), %vm1483_vm14, 1.0, %v3007_v4 }
 0x316   : > { %v1488_v19 = vsel (!%p2203_p2), %vm1486_vm13, %v2213_v18, 0 }
 0x317   : > { %v1559_v20 = vsub.f32 (!%p2203_p2), %v1488_v19, %v1488_v19 }
 0x319   : > { %v1560_v22 = vand.u32 (!%p2203_p2), 4294901760, %v1559_v20 }
 0x31b   : > { %v1561_v23 = vsub.f32 (!%p2203_p2), %v1559_v20, %v1560_v22 }
 0x31d   : > { %v1562_v25 = vand.u32 (!%p2203_p2), 4294901760, %v1561_v23 }
 0x366   : > { %v1464_v51 = vpop.f32.mrb[0].mxu0 }
 0x367   : > { %v2476_v52 = vpop.f32.mrb[1].mxu0  ;;  %1471 = sbr.rel (%p2203_p2) target bundleno = 1106 (0x452), region = 60  ;;  %2511 = vmatmul.mubr.f32.vlgmr.msra.gmra.mrb[0].mxu0 (!%p2203_p2), %v1560_v22 }
 0x368   : > { %2635 = vmatpush3.bf16.msra.mxu0 (!%p2203_p2), %v2634_v9  ;;  %2519 = vmatprep.mubr.msk.f32.mxu0 (!%p2203_p2), %vm3008_vm12, %v3007_v4 }
 0x369   : > { %2517 = vmatprep.subr.mxu0 (!%p2203_p2), %v3007_v4 }
 0x36a   : > { %v1219_v53 = vpop.f32.mrb[0].mxu1 }
 0x36b   : > { %v2648_v54 = vadd.f32 %v1464_v51, %v1219_v53  ;;  %v2431_v55 = vpop.f32.mrb[1].mxu1  ;;  %2484 = vmatmul.mubr.f32.vlgmr.msra.gmra.mrb[0].mxu1 (!%p2203_p2), %v1562_v25 }
 0x36c   : > { %2626 = vmatpush3.bf16.msra.mxu1 (!%p2203_p2), %v2625_v14  ;;  %2518 = vmatpush3.msra.mxu0 (!%p2203_p2), %v1585_v21 }
 0x36d   : > { %1468 = vst [vmem:[%s391_s28] sm:$0xff] %v2648_v54  ;;  %2490 = vmatprep.subr.mxu1 (!%p2203_p2), %v3007_v4  ;;  %2636 = vmatprep.subr.bf16.mxu0 (!%p2203_p2), %v3006_v1 }
 0x36e   : > { %2492 = vmatprep.mubr.msk.f32.mxu1 %vm3008_vm12, %v3007_v4 }
 0x36f   : > { %2520 = vmatmul.mubr.msk.f32.vlgmr.msra.gmra.mrb[0].mxu0 %vm1486_vm13, %v2213_v18 }
 0x370   : > { %2491 = vmatpush3.msra.mxu1 %v1587_v26  ;;  %2638 = vmatpush3.bf16.msra.mxu0 %v2622_v0 }
 0x371   : > { %2627 = vmatprep.subr.bf16.mxu1 %v3006_v1  ;;  %2526 = vmatprep.subr.mxu0 %v3007_v4 }
 0x372   : > { %2528 = vmatprep.mubr.msk.f32.mxu0 %vm3008_vm12, %v3007_v4 }
 0x373   : > { %2493 = vmatmul.mubr.msk.f32.vlgmr.msra.gmra.mrb[0].mxu1 %vm1486_vm13, %v2213_v18 }
 0x374   : > { %2629 = vmatpush3.bf16.msra.mxu1 %v2628_v15  ;;  %2527 = vmatpush3.msra.mxu0 %v1497_v6 }
 0x375   : > { %2499 = vmatprep.subr.mxu1 %v3007_v4  ;;  %2501 = vmatprep.mubr.msk.f32.mxu1 %vm3008_vm12, %v3007_v4 }
 0x377   : > { %2529 = vmatmul.mubr.msk.f32.vlgmr.msra.gmra.mrb[0].mxu0 %vm1486_vm13, %v2213_v18 }
 0x378   : > { %2500 = vmatpush3.msra.mxu1 %v1584_v17 }
 0x37b   : > { %2502 = vmatmul.mubr.f32.vlgmr.msra.gmra.mrb[0].mxu1 %v1559_v20 }
 0x44a   : > { %v1958_v27 = vpop.f32.mrb[0].mxu0 }
 0x44b   : > { %v2530_v28 = vpop.f32.mrb[1].mxu0 }
 0x44e   : > { %v1728_v29 = vpop.f32.mrb[0].mxu1 }
 0x44f   : > { %v2657_v30 = vadd.f32 %v1958_v27, %v1728_v29  ;;  %v2503_v31 = vpop.f32.mrb[1].mxu1 }
 0x451   : > { %1962 = vst [vmem:[%s398_s30] sm:$0xff] %v2657_v30 }
 0x452 PF: > { %s1968_s3 = sand.u32 1, %s3093_s12   ;;  %s2221_s26 = sshll.u32 %s3093_s12, 7 }
 0x453   : > { %s3406_s21 = scalar_lea.hbm %s3535_s7, %s2221_s26  ;;  %s2002_s24 = sshll.u32 %s391_s28, 4  ;;  %s3410_s24 = int_to_ptr.vmem [resolvable:$true] %s2002_s24 }
 0x454   : > { %s2220_s23 = sshll.u32 %s3229_s10, 7  ;;  %s3413_s16 = scalar_lea.sflag [#allocation9], %s1968_s3 }
 0x455   : > { %s2833_s18 = scalar_lea.vmem %s3410_s24, 128  ;;  %p3575_p10 = scmp.ne.s32.totalorder %s3563_s25, 0 }
 0x456   : > { %p2834_p7 = scmp.ne.s32.totalorder %s3410_s24, %s2833_s18  ;;  %s3009_s12 = smov [#allocation8]  }
 0x457   : > { %s2837_s17 = sshll.u32 %s3009_s12, 4  ;;  %s2838_s17 = int_to_ptr.vmem [resolvable:$false] %s2837_s17 }
 0x458   : > { %p2835_p12 = pnand %p2834_p7, %p3575_p10  ;;  %s2839_s14 = scalar_lea.vmem %s2838_s17, 256 }
 0x459   : > { %p2840_p0 = scmp.lt.s32.totalorder %s3410_s24, %s2838_s17  ;;  %p2841_p5 = scmp.lt.s32.totalorder %s2839_s14, %s2833_s18 }
 0x45a   : > { %p2836_p13 = pneg %p2835_p12 }
 0x45b   : > { %p2842_p4 = por %p2841_p5, %p2840_p0 }
 0x45d   : > { %p2843_p6 = pnand %p2842_p4, %p2836_p13 }
 0x45f   : > { %2846 = shalt.err (!%p2843_p6)
}
 0x460   : > { %s2847_s28 = scalar_lea.hbm %s3406_s21, 128  ;;  %s2851_s15 = scalar_lea.hbm %s3535_s7, 256 }
 0x461   : > { %p2848_p9 = scmp.ne.s32.totalorder %s3406_s21, %s2847_s28  ;;  %p2852_p3 = scmp.lt.u32.totalorder %s3406_s21, %s3535_s7 }
 0x462   : > { %p2853_p1 = scmp.lt.u32.totalorder %s2851_s15, %s2847_s28  ;;  %p2855_p7 = scmp.lt.u32.totalorder %s2847_s28, %s3406_s21 }
 0x463   : > { %p2849_p8 = pnand %p2848_p9, %p3575_p10 }
 0x464   : > { %p2854_p2 = por %p2853_p1, %p2852_p3 }
 0x465   : > { %p2850_p11 = pneg %p2849_p8 }
 0x466   : > { %p2856_p12 = por %p2855_p7, %p2854_p2 }
 0x468   : > { %p2857_p13 = pnand %p2856_p12, %p2850_p11 }
 0x46a   : > { %2860 = shalt.err (!%p2857_p13)
}
 0x46b   : > { %2675 = dma.vmem_to_hbm [thread:$0]  (%p3575_p10), %s3410_s24, 128, %s3406_s21, %s3413_s16  }
 0x46c   : > { %s3442_s18 = scalar_lea.hbm %s3534_s6, %s2220_s23  ;;  %s1989_s12 = sshll.u32 %s384_s5, 4  ;;  %s3446_s12 = int_to_ptr.vmem [resolvable:$true] %s1989_s12 }
 0x46d   : > { %s3453_s14 = scalar_lea.hbm %s3536_s8, %s2220_s23  ;;  %s3576_s21 = sand.u32 1, %s2983_s9  }
 0x46e   : > { %s1964_s24 = scalar_lea.sflag [#allocation4], %s3576_s21  ;;  %s2861_s28 = scalar_lea.vmem %s3446_s12, 128 }
 0x46f   : > { %p2862_p10 = scmp.ne.s32.totalorder %s3446_s12, %s2861_s28  ;;  %p3577_p0 = scmp.ne.s32.totalorder %s3558_s19, 0 }
 0x470   : > { %s3010_s20 = smov [#allocation7]  }
 0x471   : > { %p2863_p5 = pnand %p2862_p10, %p3577_p0  ;;  %s2865_s5 = sshll.u32 %s3010_s20, 4  ;;  %s2866_s5 = int_to_ptr.vmem [resolvable:$false] %s2865_s5 }
 0x472   : > { %s2867_s22 = scalar_lea.vmem %s2866_s5, 256  ;;  %p2868_p6 = scmp.lt.s32.totalorder %s3446_s12, %s2866_s5 }
 0x473   : > { %p2864_p4 = pneg %p2863_p5  ;;  %p2869_p9 = scmp.lt.s32.totalorder %s2867_s22, %s2861_s28 }
 0x475   : > { %p2870_p8 = por %p2869_p9, %p2868_p6 }
 0x477   : > { %p2871_p11 = pnand %p2870_p8, %p2864_p4 }
 0x479   : > { %2874 = shalt.err (!%p2871_p11)
}
 0x47a   : > { %s2875_s10 = scalar_lea.hbm %s3442_s18, 128  ;;  %s2879_s3 = scalar_lea.hbm %s3534_s6, 128 }
 0x47b   : > { %p2876_p3 = scmp.ne.s32.totalorder %s3442_s18, %s2875_s10  ;;  %p2880_p7 = scmp.lt.u32.totalorder %s3442_s18, %s3534_s6 }
 0x47c   : > { %p2881_p12 = scmp.lt.u32.totalorder %s2879_s3, %s2875_s10  ;;  %p2883_p10 = scmp.lt.u32.totalorder %s2875_s10, %s3442_s18 }
 0x47d   : > { %p2877_p1 = pnand %p2876_p3, %p3577_p0 }
 0x47e   : > { %p2882_p13 = por %p2881_p12, %p2880_p7 }
 0x47f   : > { %p2878_p2 = pneg %p2877_p1 }
 0x480   : > { %p2884_p5 = por %p2883_p10, %p2882_p13 }
 0x482   : > { %p2885_p4 = pnand %p2884_p5, %p2878_p2 }
 0x484   : > { %2888 = shalt.err (!%p2885_p4)
}
 0x485   : > { %2674 = dma.vmem_to_hbm [thread:$0]  (%p3577_p0), %s3446_s12, 128, %s3442_s18, %s1964_s24  }
 0x486   : > { %s2017_s29 = sshll.u32 %s398_s30, 4  ;;  %s3011_s17 = smov [#allocation10]   ;;  %s2018_s29 = int_to_ptr.vmem [resolvable:$true] %s2017_s29 }
 0x487   : > { %s2889_s25 = scalar_lea.vmem %s2018_s29, 128  ;;  %s2893_s21 = sshll.u32 %s3011_s17, 4  ;;  %s2894_s21 = int_to_ptr.vmem [resolvable:$false] %s2893_s21 }
 0x488   : > { %p2890_p6 = scmp.ne.s32.totalorder %s2018_s29, %s2889_s25  ;;  %s2895_s28 = scalar_lea.vmem %s2894_s21, 256 }
 0x489   : > { %p2896_p11 = scmp.lt.s32.totalorder %s2018_s29, %s2894_s21  ;;  %p2897_p3 = scmp.lt.s32.totalorder %s2895_s28, %s2889_s25 }
 0x48a   : > { %p2891_p9 = pnand %p2890_p6, %p3577_p0 }
 0x48b   : > { %p2898_p1 = por %p2897_p3, %p2896_p11 }
 0x48c   : > { %p2892_p8 = pneg %p2891_p9 }
 0x48e   : > { %p2899_p2 = pnand %p2898_p1, %p2892_p8 }
 0x490   : > { %2902 = shalt.err (!%p2899_p2)
}
 0x491   : > { %s2903_s30 = scalar_lea.hbm %s3453_s14, 128  ;;  %s2907_s12 = scalar_lea.hbm %s3536_s8, 128 }
 0x492   : > { %p2904_p7 = scmp.ne.s32.totalorder %s3453_s14, %s2903_s30  ;;  %p2908_p10 = scmp.lt.u32.totalorder %s3453_s14, %s3536_s8 }
 0x493   : > { %p2909_p5 = scmp.lt.u32.totalorder %s2907_s12, %s2903_s30  ;;  %p2911_p6 = scmp.lt.u32.totalorder %s2903_s30, %s3453_s14 }
 0x494   : > { %p2905_p12 = pnand %p2904_p7, %p3577_p0 }
 0x495   : > { %p2910_p4 = por %p2909_p5, %p2908_p10 }
 0x496   : > { %p2906_p13 = pneg %p2905_p12 }
 0x497   : > { %p2912_p9 = por %p2911_p6, %p2910_p4 }
 0x499   : > { %p2913_p8 = pnand %p2912_p9, %p2906_p13 }
 0x49b   : > { %2916 = shalt.err (!%p2913_p8)
}
 0x49c   : > { %2676 = dma.vmem_to_hbm [thread:$0]  (%p3577_p0), %s2018_s29, 128, %s3453_s14, %s3413_s16  }
 0x49d PF: > { %s3578_s5 = sld [smem:[#allocation18_spill]]  ;;  %s3579_s22 = sld [smem:[#allocation22_spill]] }
 0x49e   : > { %p2701_p11 = scmp.ge.s32.totalorder %s2991_s11, 2 }
 0x4a3   : > { %s2029_s10 = sand.u32 1, %s3578_s5   ;;  %p3580_p3 = scmp.ne.s32.totalorder %s3579_s22, 0 }
 0x4a4   : > { %s2030_s23 = scalar_lea.sflag [#allocation4], %s2029_s10 }
 0x4a5   : > { %p2688_p1 = pnand %p2701_p11, %p3580_p3 }
 0x4a7   : > { %2954 = dma.done.wait (!%p2688_p1), %s2030_s23, 128  }
 0x4a8   : > { %2956 = vsyncadd (!%p2688_p1), %s2030_s23, 4294967168  ;;  %s3581_s15 = sadd.s32 4294967294, %s2991_s11   ;;  %s3582_s3 = sld [smem:[#allocation24_spill]] }
 0x4a9   : > { %s2038_s26 = sand.u32 1, %s3581_s15  }
 0x4aa   : > { %s2039_s19 = scalar_lea.sflag [#allocation9], %s2038_s26 }
 0x4ae   : > { %p3583_p2 = scmp.ne.s32.totalorder %s3582_s3, 0 }
 0x4b0   : > { %p2691_p7 = pnand %p2701_p11, %p3583_p2 }
 0x4b2   : > { %2958 = dma.done.wait (!%p2691_p7), %s2039_s19, 128  }
 0x4b3   : > { %2960 = vsyncadd (!%p2691_p7), %s2039_s19, 4294967168 }
 0x4b4   : > { %2962 = dma.done.wait (!%p2688_p1), %s2039_s19, 128  }
 0x4b5   : > { %2964 = vsyncadd (!%p2688_p1), %s2039_s19, 4294967168  ;;  %s3584_s11 = sld [smem:[#allocation20_spill]]  ;;  %s3585_s27 = sld [smem:[#allocation16_spill]] }
 0x4b6   : > { %s3586_s28 = sld [smem:[#allocation17_spill]]  ;;  %s3587_s29 = sld [smem:[#allocation23_spill]] }
 0x4b7   : > { %s3588_s16 = sld [smem:[#allocation19_spill]]  ;;  %s3589_s10 = sld [smem:[#allocation21_spill]] }
 0x4b8   : > { %s3590_s30 = smov %s2983_s9 }
 0x4bb   : > { %p24_p0 = scmp.ge.s32.totalorder %s3584_s11, 4  }
 0x4bd   : > { %s3591_s9 = smov %s3588_s16  ;;  %26 = sbr.rel (!%p24_p0) target bundleno = 12 (0xc), region = 134 }
 0x4c4   :  { %2053 = vsyncpa [#allocation3], 1 }
 0x4c5   :  { %2055 = vsyncpa [#allocation3 + $0x1], 1 }
 0x4c6   :  { %2056 = vsyncpa [#allocation6], 1 }
 0x4c7   :  { %2057 = vsyncpa [#allocation4], 1 }
 0x4c8   :  { %2059 = vsyncpa [#allocation4 + $0x1], 1 }
 0x4c9   :  { %2060 = vsyncpa [#allocation9], 1 }
 0x4ca   :  { %2062 = vsyncpa [#allocation9 + $0x1], 1 }

</bundles_post_ra>
